<compile_context>
chip_gen: v7x
topology: tpu7x:2x2x1
jax: 0.10.0
libtpu: 0.0.40
codegen_flags: <defaults>
</compile_context>

<pallas_src>
import functools

import jax
import jax.numpy as jnp
from jax import lax
from jax.experimental import pallas as pl
from jax.experimental.pallas import tpu as pltpu


def _embed_gather_kernel(ids_ref, table_ref, out_ref, scratch_ref, sem,
                         *, tokens_per_block, n_tokens):
    """Gather `tokens_per_block` embedding rows for grid step i.

    ids_ref     : SMEM (N,)       int32  -- scalar-prefetched token ids
    table_ref   : HBM  (V, D)            -- embedding table (never VMEM-resident)
    out_ref     : VMEM (tpb, D)          -- output tile (pipelined by Pallas)
    scratch_ref : VMEM (tpb, D)          -- DMA gather landing buffer
    sem         : DMA semaphore (shared by all row copies of this step)
    """
    i = pl.program_id(0)
    base = i * tokens_per_block
    vocab = table_ref.shape[0]

    # Issue all row DMAs; they are independent and overlap each other.
    def start_row(j, carry):
        # Clamp tail slots of the (possibly partial) last block to a valid
        # token, and clamp the id itself: VMEM/HBM refs have no runtime OOB
        # check, so a bad id must never become a DMA source offset.
        tok = jnp.minimum(base + j, n_tokens - 1)
        idx = jnp.clip(ids_ref[tok], 0, vocab - 1)
        pltpu.make_async_copy(
            table_ref.at[pl.ds(idx, 1), :],
            scratch_ref.at[pl.ds(j, 1), :],
            sem,
        ).start()
        return carry

    lax.fori_loop(0, tokens_per_block, start_row, 0)

    # Wait for all of them (same-sized descriptors on the shared semaphore).
    def wait_row(j, carry):
        pltpu.make_async_copy(
            table_ref.at[pl.ds(0, 1), :],
            scratch_ref.at[pl.ds(j, 1), :],
            sem,
        ).wait()
        return carry

    lax.fori_loop(0, tokens_per_block, wait_row, 0)

    # One dense, lane- and sublane-aligned tile store (no per-row vst).
    out_ref[...] = scratch_ref[...]


def news_embedding_forward(news, news_mask, table, *, tokens_per_block=128):
    """Pallas equivalent of NewsEmbedding.forward for 'init'/'glove' types.

    news      : (B, S) int32 token ids
    news_mask : (B, S) -- unused (matches reference forward on this path)
    table     : (V, D) float   embedding weights
    returns   : (B, S, D)
    """
    del news_mask  # not used by the 'glove'/'init' forward path
    B, S = news.shape
    V, D = table.shape
    N = B * S

    ids = news.reshape(N).astype(jnp.int32)

    # Keep the per-step tile a multiple of 8 sublanes, but never bigger than
    # the (rounded-up) number of tokens.
    tpb = max(8, min(tokens_per_block, ((N + 7) // 8) * 8))
    grid = (pl.cdiv(N, tpb),)

    kernel = functools.partial(
        _embed_gather_kernel, tokens_per_block=tpb, n_tokens=N)

    out = pl.pallas_call(
        kernel,
        out_shape=jax.ShapeDtypeStruct((N, D), table.dtype),
        grid_spec=pltpu.PrefetchScalarGridSpec(
            num_scalar_prefetch=1,
            grid=grid,
            # Table stays in HBM; rows are gathered by manual DMA.
            in_specs=[pl.BlockSpec(memory_space=pl.ANY)],
            out_specs=pl.BlockSpec((tpb, D), lambda i, ids: (i, 0)),
            scratch_shapes=[
                pltpu.VMEM((tpb, D), table.dtype),   # gather landing buffer
                pltpu.SemaphoreType.DMA,             # shared DMA semaphore
            ],
        ),
        compiler_params=pltpu.CompilerParams(
            dimension_semantics=("parallel",)),      # steps are independent
    )(ids, table)

    return out.reshape(B, S, D)


if __name__ == "__main__":
    # Small, TPU-friendly sizes implied by the module's 'init' branch:
    # vocab = len(word_dict), embed_dim = kwargs['embed_dim'].
    B, S = 2, 8           # batch of news, tokens per news
    V, D = 128, 128       # vocab size, embedding dim

    key = jax.random.PRNGKey(0)
    k_tab, k_ids = jax.random.split(key)

    # Deterministic "trained" embedding table; padding_idx=0 => row 0 is zeros
    # (matches nn.Embedding(len(word_dict), embed_dim, padding_idx=0)).
    table = 0.02 * jax.random.normal(k_tab, (V, D), dtype=jnp.float32)
    table = table.at[0].set(0.0)

    news = jax.random.randint(k_ids, (B, S), minval=0, maxval=V,
                              dtype=jnp.int32)
    news_mask = (news != 0).astype(jnp.float32)   # unused, kept for signature

    out = news_embedding_forward(news, news_mask, table)
    out = jax.block_until_ready(out)

    # Reference: plain JAX embedding lookup (== nn.Embedding forward).
    ref = jnp.take(table, news, axis=0)
    assert out.shape == (B, S, D), out.shape
    assert jnp.array_equal(out, ref), "mismatch vs reference"

    print("KERNEL_OK")
</pallas_src>

<mosaic_0001>
module attributes {stable_mosaic.version = 11 : i64} {
  func.func @_embed_gather_kernel(%arg0: i32, %arg1: memref<16xi32, #tpu.memory_space<smem>>, %arg2: memref<128x128xf32, #tpu.memory_space<any>>, %arg3: memref<16x128xf32, #tpu.memory_space<vmem>>, %arg4: memref<16x128xf32, #tpu.memory_space<vmem>>, %arg5: memref<!tpu.dma_semaphore, #tpu.memory_space<semaphore_mem>>) attributes {dimension_semantics = [#tpu.dimension_semantics<parallel>], iteration_bounds = array<i64: 1>, scalar_prefetch = 1 : i64, scratch_operands = 2 : i64, tpu.core_type = #tpu.core_type<tc>, window_params = [{}, {transform_indices = @transform_1, window_bounds = array<i64: 16, 128>}]} {
    %c16_i32 = arith.constant 16 : i32
    %0 = arith.muli %arg0, %c16_i32 : i32
    %c0_i32 = arith.constant 0 : i32
    %c16_i32_0 = arith.constant 16 : i32
    %1 = arith.addi %c0_i32, %c16_i32_0 : i32
    %c1_i32 = arith.constant 1 : i32
    scf.for %arg6 = %c0_i32 to %1 step %c1_i32  : i32 {
      %5 = arith.addi %0, %arg6 : i32
      %c15_i32 = arith.constant 15 : i32
      %6 = arith.minsi %5, %c15_i32 : i32
      %7 = arith.index_cast %6 : i32 to index
      %8 = memref.load %arg1[%7] : memref<16xi32, #tpu.memory_space<smem>>
      %c0_i32_9 = arith.constant 0 : i32
      %c127_i32 = arith.constant 127 : i32
      %9 = arith.maxsi %c0_i32_9, %8 : i32
      %10 = arith.minsi %c127_i32, %9 : i32
      %c0_i32_10 = arith.constant 0 : i32
      %11 = tpu.memref_slice %arg2[%10, %c0_i32_10] : memref<128x128xf32, #tpu.memory_space<any>> -> memref<1x128xf32, #tpu.memory_space<any>>
      %c0_i32_11 = arith.constant 0 : i32
      %12 = tpu.memref_slice %arg4[%arg6, %c0_i32_11] : memref<16x128xf32, #tpu.memory_space<vmem>> -> memref<1x128xf32, #tpu.memory_space<vmem>>
      tpu.enqueue_dma source(%11 : memref<1x128xf32, #tpu.memory_space<any>>) target(%12 : memref<1x128xf32, #tpu.memory_space<vmem>>) target_semaphore(%arg5 : memref<!tpu.dma_semaphore, #tpu.memory_space<semaphore_mem>>)
    }
    %c16_i32_1 = arith.constant 16 : i32
    %c0_i32_2 = arith.constant 0 : i32
    %c16_i32_3 = arith.constant 16 : i32
    %2 = arith.addi %c0_i32_2, %c16_i32_3 : i32
    %c1_i32_4 = arith.constant 1 : i32
    scf.for %arg6 = %c0_i32_2 to %2 step %c1_i32_4  : i32 {
      %c0_i32_9 = arith.constant 0 : i32
      %c0_i32_10 = arith.constant 0 : i32
      %5 = tpu.memref_slice %arg2[%c0_i32_9, %c0_i32_10] : memref<128x128xf32, #tpu.memory_space<any>> -> memref<1x128xf32, #tpu.memory_space<any>>
      %c0_i32_11 = arith.constant 0 : i32
      %6 = tpu.memref_slice %arg4[%arg6, %c0_i32_11] : memref<16x128xf32, #tpu.memory_space<vmem>> -> memref<1x128xf32, #tpu.memory_space<vmem>>
      tpu.wait_dma2 semaphore(%arg5 : memref<!tpu.dma_semaphore, #tpu.memory_space<semaphore_mem>>) src(%5 : memref<1x128xf32, #tpu.memory_space<any>>) dst(%6 : memref<1x128xf32, #tpu.memory_space<vmem>>)
    }
    %c16_i32_5 = arith.constant 16 : i32
    %c0 = arith.constant 0 : index
    %c0_6 = arith.constant 0 : index
    %3 = vector.load %arg4[%c0, %c0_6] : memref<16x128xf32, #tpu.memory_space<vmem>>, vector<16x128xf32>
    %c0_7 = arith.constant 0 : index
    %c0_8 = arith.constant 0 : index
    %4 = vector.load %arg3[%c0_7, %c0_8] : memref<16x128xf32, #tpu.memory_space<vmem>>, vector<16x128xf32>
    tpu.vector_store %arg3[%c0_7, %c0_8], %3 {strides = array<i32>} : memref<16x128xf32, #tpu.memory_space<vmem>>, vector<16x128xf32>,
    return
  }
  func.func @transform_1(%arg0: i32, %arg1: memref<16xi32, #tpu.memory_space<smem>>) -> (i32, i32) {
    %c0_i32 = arith.constant 0 : i32
    %c0_i32_0 = arith.constant 0 : i32
    return %arg0, %c0_i32 : i32, i32
  }
}

</mosaic_0001>

<bundles_post_ra>
// kernel: tpu_custom_call.1
= control target key start
LH: loop header
LB: loop body
LE: loop exit
PB: predicated region body
PF: predicated region fallthrough
CT: control target
= control target key end

     0   :  { %s260_s0 = inlined_call_operand.hbm [shape: s32[16], index: 0, kind: input, shape index: {}]   ;;  %s261_s1 = inlined_call_operand.hbm [shape: f32[128,128], index: 1, kind: input, shape index: {}]   ;;  %s262_s2 = inlined_call_operand.hbm [shape: f32[16,128], index: 2, kind: output, shape index: {}]  }
   0x1   :  { %s118_s11 = scalar_lea.hbm %s260_s0, 16 }
   0x2   :  { %p119_p0 = scmp.ne.s32.totalorder %s260_s0, %s118_s11  ;;  %p122_p1 = scmp.lt.u32.totalorder %s118_s11, %s260_s0 }
   0x4   :  { %p124_p2 = pnand %p122_p1, %p119_p0 }
   0x6   :  { %127 = shalt.err (!%p124_p2)  }
   0x7   :  { %s196_s16 = smov [#allocation5]  }
   0x8   :  { %8 = dma.hbm_to_smem %s260_s0, 16, %s196_s16, [#allocation4] }
   0x9   :  { %182 = dma.done.wait [#allocation4], 16 }
   0xa   :  { %183 = vsyncadd [#allocation4], 4294967280 }
   0xb   :  { %10 = sfence }
   0xc   :  { %11 = vsyncpa [#allocation7], 0  ;;  %s228_s19 = smov 0  }
   0xd LB: > { %p20_p3 = scmp.lt.s32.totalorder %s190_s19, 15  ;;  %s29_s0 = scalar_lea.vmem [#allocation2], %s190_s19  ;;  %s190_s19 = sphi %s228_s19, %s18_s19  }
   0xe   : > { %s37_s22 = sshll.u32 %s29_s0, 4  ;;  %s130_s30 = scalar_lea.hbm %s261_s1, 2048  ;;  %s38_s22 = int_to_ptr.vmem [resolvable:$true] %s37_s22 }
   0xf   : > { %s21_s20 = scalar_select %p20_p3, %s190_s19, 15 }
  0x11   : > { %s22_s21 = sld [smem:[#allocation5 + %s21_s20]] }
  0x17   : > { %p23_p4 = scmp.gt.s32.totalorder %s22_s21, 0  ;;  %p89_p5 = scmp.lt.s32.totalorder %s22_s21, 127 }
  0x19   : > { %s264_s21 = smov (!%p23_p4, %s22_s21), 0 }
  0x1a   : > { %s266_s21 = smov (!%p89_p5, %s264_s21), 127 }
  0x1b   : > { %s94_s23 = sshll.u32 %s266_s21, 4 }
  0x1c   : > { %s28_s26 = scalar_lea.hbm %s261_s1, %s94_s23 }
  0x1d   : > { %s128_s27 = scalar_lea.hbm %s28_s26, 16  ;;  %p131_p7 = scmp.lt.u32.totalorder %s28_s26, %s261_s1 }
  0x1e   : > { %p129_p6 = scmp.ne.s32.totalorder %s28_s26, %s128_s27  ;;  %p132_p8 = scmp.lt.u32.totalorder %s130_s30, %s128_s27 }
  0x1f   : > { %p134_p10 = scmp.lt.u32.totalorder %s128_s27, %s28_s26 }
  0x20   : > { %p133_p9 = por %p132_p8, %p131_p7 }
  0x22   : > { %p135_p11 = por %p134_p10, %p133_p9 }
  0x24   : > { %p136_p12 = pnand %p135_p11, %p129_p6 }
  0x26   : > { %139 = shalt.err (!%p136_p12)  }
  0x27   : > { %s140_s5 = scalar_lea.vmem %s38_s22, 16  ;;  %s197_s6 = smov [#allocation2]  }
  0x28   : > { %p141_p13 = scmp.ne.s32.totalorder %s38_s22, %s140_s5  ;;  %s142_s7 = sshll.u32 %s197_s6, 4  ;;  %s143_s7 = int_to_ptr.vmem [resolvable:$false] %s142_s7 }
  0x29   : > { %s144_s8 = scalar_lea.vmem %s143_s7, 256  ;;  %p145_p0 = scmp.lt.s32.totalorder %s38_s22, %s143_s7 }
  0x2a   : > { %p146_p1 = scmp.lt.s32.totalorder %s144_s8, %s140_s5 }
  0x2c   : > { %p147_p2 = por %p146_p1, %p145_p0 }
  0x2e   : > { %p148_p3 = pnand %p147_p2, %p141_p13 }
  0x30   : > { %151 = shalt.err (!%p148_p3)  }
  0x31   : > { %40 = dma.hbm_to_vmem [thread:$0]  %s28_s26, 16, %s38_s22, [#allocation3] }
  0x32   : > { %s18_s19 = sadd.s32 1, %s190_s19  }
  0x33   : > { %p15_p4 = scmp.ge.s32.totalorder %s18_s19, 16  }
  0x34   :  { %s192_s9 = smov (%p15_p4), 0  }
  0x35   :  { %17 = sbr.rel (!%p15_p4) target bundleno = 13 (0xd), region = 40 }
  0x3c LB: > { %184 = dma.done.wait [#allocation3], 16  ;;  %s194_s9 = sphi %s192_s9, %s46_s9  }
  0x3d   : > { %185 = vsyncadd [#allocation3], 4294967280  ;;  %s46_s9 = sadd.s32 1, %s194_s9  }
  0x3e   : > { %p43_p5 = scmp.ge.s32.totalorder %s46_s9, 16  }
  0x3f   :  { %v50_v0 = vld [vmem:[#allocation2] sm:$0xff] (%p43_p5)  ;;  %v51_v1 = vld [vmem:[#allocation2 + $0x8] sm:$0xff] (%p43_p5)  ;;  %s198_s10 = smov (%p43_p5), [#allocation6]  }
  0x40   :  { %45 = sbr.rel (!%p43_p5) target bundleno = 60 (0x3c), region = 51  ;;  %52 = vst [vmem:[#allocation6] sm:$0xff] (%p43_p5), %v50_v0  ;;  %53 = vst [vmem:[#allocation6 + $0x8] sm:$0xff] (%p43_p5), %v51_v1  ;;  %s59_s11 = sshll.u32 (%p43_p5), %s198_s10, 4  ;;  %s60_s11 = int_to_ptr.vmem [resolvable:$true] %s59_s11 }
  0x41   :  { %s152_s12 = scalar_lea.vmem (%p43_p5), %s60_s11, 256  ;;  %p157_p7 = scmp.lt.s32.totalorder (%p43_p5), %s60_s11, %s60_s11 }
  0x42   :  { %p153_p6 = scmp.ne.s32.totalorder (%p43_p5), %s60_s11, %s152_s12  ;;  %p158_p8 = scmp.lt.s32.totalorder (%p43_p5), %s152_s12, %s152_s12 }
  0x44   :  { %p159_p9 = por (%p43_p5), %p158_p8, %p157_p7 }
  0x46   :  { %p160_p10 = pnand (%p43_p5), %p159_p9, %p153_p6 }
  0x48   :  { %163 = shalt.err (!%p160_p10)
}
  0x49   :  { %s164_s14 = scalar_lea.hbm %s262_s2, 256 }
  0x4a   :  { %p165_p11 = scmp.ne.s32.totalorder %s262_s2, %s164_s14  ;;  %p168_p12 = scmp.lt.u32.totalorder %s164_s14, %s262_s2 }
  0x4c   :  { %p170_p13 = pnand %p168_p12, %p165_p11 }
  0x4e   :  { %173 = shalt.err (!%p170_p13)
}
  0x4f   :  { %s199_s19 = smov 128   ;;  %s200_s20 = smov 8  }
  0x50   :  { %65 = dma.vmem_to_hbm [thread:$0]  %s60_s11, 256, %s262_s2, [#allocation7], %s199_s19, %s199_s19, %s200_s20  }
  0x51   :  { %186 = dma.done.wait [#allocation7], 256  }
  0x52   :  { %187 = vsyncadd [#allocation7], 4294967040 }
  0x53   :  { %69 = vsyncpa [#allocation7], 1 }
  0x54   :  { %70 = vsyncmov [#allocation3] }
  0x57   :  { %s71_s22 = vpop.sfrf %70 }
  0x58   :  { %p95_p0 = scmp.ne.s32.totalorder %s71_s22, 0 }
  0x5a   :  { %75 = shalt.err (%p95_p0)  }

</bundles_post_ra>
